<compile_context>
chip_gen: v5e
topology: v5e:2x2
jax: 0.10.0
libtpu: 0.0.40
codegen_flags: <defaults>
</compile_context>

<pallas_src>
import functools

import jax
import jax.numpy as jnp
from jax.experimental import pallas as pl
from jax.experimental.pallas import tpu as pltpu


def _mcos_loss_kernel(phi_ref, feat_ref, y_ref, out_ref, *, scale, alpha, batch):
    """One batch tile: feat_ref (C, TB), y_ref (1, TB) -> out_ref (1, 128) partial sum."""
    feat = feat_ref[...].astype(jnp.float32)                  # (C, TB); cast in-kernel
    C, TB = feat.shape
    phi = phi_ref[0]                                          # scalar (SMEM, prefetched)
    y = y_ref[...]                                            # (1, TB) int32

    # one-hot(y) via sublane-iota compare (classes live on the sublane axis).
    row = jax.lax.broadcasted_iota(jnp.int32, (C, TB), 0)
    onehot = row == y                                         # (C, TB) bool

    # Exact margin select (matches the PyTorch where()).
    shifted = feat + phi
    value = scale * jnp.where(onehot, shifted - alpha, shifted + alpha)

    # Numerically stable logsumexp over the class (sublane) axis.
    m = jnp.max(value, axis=0, keepdims=True)                 # (1, TB)
    lse = m + jnp.log(jnp.sum(jnp.exp(value - m), axis=0, keepdims=True))

    # Target logit = scale * (feat[y] + phi - alpha), gathered with the same mask.
    shifted_y = jnp.sum(jnp.where(onehot, shifted, 0.0), axis=0, keepdims=True)
    per_sample = lse - scale * (shifted_y - alpha)            # (1, TB)

    # Mask padded batch columns, reduce this tile to one partial sum (XLU lane
    # reduce), and park it in lane 0 of this tile's lane-dense (1, 128) out slot.
    col = pl.program_id(0) * TB + jax.lax.broadcasted_iota(jnp.int32, (1, TB), 1)
    tile_sum = jnp.sum(jnp.where(col < batch, per_sample, 0.0),
                       axis=1, keepdims=True)                 # (1, 1)
    lane = jax.lax.broadcasted_iota(jnp.int32, (1, out_ref.shape[1]), 1)
    out_ref[...] = jnp.where(lane == 0, tile_sum, 0.0)


def _round_up(x, m):
    return (x + m - 1) // m * m


def mcos_loss(feat, y, phi, *, num_cls=10, s=15.0, alpha=0.1, max_tile_b=16384):
    """Pallas implementation of mCosLoss.forward(feat, y) -> scalar loss."""
    B, C = feat.shape
    assert C == num_cls

    # Batch-on-lanes layout: (C, B_pad). Balanced, lane-aligned batch tiles.
    if B <= max_tile_b:
        num_tiles = 1
        tile_b = _round_up(B, 128)
    else:
        num_tiles = (B + max_tile_b - 1) // max_tile_b
        tile_b = _round_up((B + num_tiles - 1) // num_tiles, 128)
    b_pad = tile_b * num_tiles

    feat_t = jnp.swapaxes(feat, 0, 1)                         # (C, B), native dtype
    y_row = y.reshape(1, B).astype(jnp.int32)                 # lane-major labels
    if b_pad != B:
        feat_t = jnp.pad(feat_t, ((0, 0), (0, b_pad - B)))
        y_row = jnp.pad(y_row, ((0, 0), (0, b_pad - B)))
    phi = jnp.asarray(phi, jnp.float32).reshape(1)

    kernel = functools.partial(_mcos_loss_kernel, scale=float(s),
                               alpha=float(alpha), batch=B)

    partials = pl.pallas_call(
        kernel,
        out_shape=jax.ShapeDtypeStruct((1, num_tiles * 128), jnp.float32),
        grid_spec=pltpu.PrefetchScalarGridSpec(
            num_scalar_prefetch=1,                            # phi -> SMEM
            grid=(num_tiles,),
            in_specs=[
                pl.BlockSpec((C, tile_b), lambda i, phi_ref: (0, i)),   # feat (C, B_pad)
                pl.BlockSpec((1, tile_b), lambda i, phi_ref: (0, i)),   # labels (1, B_pad)
            ],
            out_specs=pl.BlockSpec((1, 128), lambda i, phi_ref: (0, i)),
        ),
        compiler_params=pltpu.CompilerParams(
            dimension_semantics=("parallel",),                # megacore shard on v7x
        ),
    )(phi, feat_t, y_row)

    # Non-lane-0 entries are zero; a tiny JAX sum finishes the batch mean.
    return jnp.sum(partials) / B


def _mcos_loss_ref(feat, y, phi, *, num_cls=10, s=15.0, alpha=0.1):
    """Pure-JAX reference (mirrors the PyTorch forward)."""
    feat = feat.astype(jnp.float32) + jnp.asarray(phi, jnp.float32).reshape(())
    onehot = jax.nn.one_hot(y, num_cls, dtype=jnp.float32)
    value = s * (onehot * (feat - alpha) + (1.0 - onehot) * (feat + alpha))
    logp = jax.nn.log_softmax(value, axis=-1)
    return -jnp.mean(jnp.sum(onehot * logp, axis=-1))


if __name__ == "__main__":
    num_cls = 10
    B = 8
    scale = 15.0
    alpha = 0.1

    key = jax.random.PRNGKey(0)
    k_feat, k_lab = jax.random.split(key)
    feat = jax.random.normal(k_feat, (B, num_cls), dtype=jnp.float32)
    y = jax.random.randint(k_lab, (B,), 0, num_cls, dtype=jnp.int32)

    # Deterministic init of the module's single parameter phi (nn.Parameter(Tensor(1))).
    phi = jnp.full((1,), 0.1, dtype=jnp.float32)

    loss = mcos_loss(feat, y, phi, num_cls=num_cls, s=scale, alpha=alpha)
    loss = jax.block_until_ready(loss)

    ref = _mcos_loss_ref(feat, y, phi, num_cls=num_cls, s=scale, alpha=alpha)
    assert jnp.allclose(loss, ref, rtol=1e-5, atol=1e-5), (loss, ref)

    print("KERNEL_OK")
</pallas_src>

<mosaic_0001>
module attributes {stable_mosaic.version = 11 : i64} {
  func.func @_mcos_loss_kernel(%arg0: i32, %arg1: memref<1xf32, #tpu.memory_space<smem>>, %arg2: memref<10x128xf32, #tpu.memory_space<vmem>>, %arg3: memref<1x128xi32, #tpu.memory_space<vmem>>, %arg4: memref<1x128xf32, #tpu.memory_space<vmem>>) attributes {dimension_semantics = [#tpu.dimension_semantics<parallel>], iteration_bounds = array<i64: 1>, scalar_prefetch = 1 : i64, scratch_operands = 0 : i64, tpu.core_type = #tpu.core_type<tc>, window_params = [{transform_indices = @transform_0, window_bounds = array<i64: 10, 128>}, {transform_indices = @transform_1, window_bounds = array<i64: 1, 128>}, {transform_indices = @transform_2, window_bounds = array<i64: 1, 128>}]} {
    %c0 = arith.constant 0 : index
    %c0_0 = arith.constant 0 : index
    %0 = vector.load %arg2[%c0, %c0_0] : memref<10x128xf32, #tpu.memory_space<vmem>>, vector<10x128xf32>
    %c0_1 = arith.constant 0 : index
    %1 = memref.load %arg1[%c0_1] : memref<1xf32, #tpu.memory_space<smem>>
    %c0_2 = arith.constant 0 : index
    %c0_3 = arith.constant 0 : index
    %2 = vector.load %arg3[%c0_2, %c0_3] : memref<1x128xi32, #tpu.memory_space<vmem>>, vector<1x128xi32>
    %3 = tpu.iota {dimensions = array<i32: 0>} : vector<10x128xi32>
    %4 = vector.broadcast %2 : vector<1x128xi32> to vector<10x128xi32>
    %5 = arith.cmpi eq, %3, %4 : vector<10x128xi32>
    %6 = vector.broadcast %1 : f32 to vector<10x128xf32>
    %7 = arith.addf %0, %6 : vector<10x128xf32>
    %cst = arith.constant 1.000000e-01 : f32
    %8 = vector.broadcast %cst : f32 to vector<10x128xf32>
    %9 = arith.subf %7, %8 : vector<10x128xf32>
    %cst_4 = arith.constant 1.000000e-01 : f32
    %10 = vector.broadcast %cst_4 : f32 to vector<10x128xf32>
    %11 = arith.addf %7, %10 : vector<10x128xf32>
    %12 = arith.select %5, %9, %11 : vector<10x128xi1>, vector<10x128xf32>
    %cst_5 = arith.constant 1.500000e+01 : f32
    %13 = vector.broadcast %cst_5 : f32 to vector<10x128xf32>
    %14 = arith.mulf %13, %12 : vector<10x128xf32>
    %cst_6 = arith.constant dense<0xFF800000> : vector<128xf32>
    %15 = vector.multi_reduction <maximumf>, %14, %cst_6 [0] : vector<10x128xf32> to vector<128xf32>
    %16 = vector.shape_cast %15 : vector<128xf32> to vector<1x128xf32>
    %17 = vector.broadcast %16 : vector<1x128xf32> to vector<10x128xf32>
    %18 = arith.subf %14, %17 : vector<10x128xf32>
    %19 = math.exp %18 : vector<10x128xf32>
    %cst_7 = arith.constant dense<0.000000e+00> : vector<128xf32>
    %20 = vector.multi_reduction <add>, %19, %cst_7 [0] : vector<10x128xf32> to vector<128xf32>
    %21 = vector.shape_cast %20 : vector<128xf32> to vector<1x128xf32>
    %22 = math.log %21 : vector<1x128xf32>
    %23 = arith.addf %16, %22 : vector<1x128xf32>
    %cst_8 = arith.constant 0.000000e+00 : f32
    %24 = vector.broadcast %cst_8 : f32 to vector<10x128xf32>
    %25 = arith.select %5, %7, %24 : vector<10x128xi1>, vector<10x128xf32>
    %cst_9 = arith.constant dense<0.000000e+00> : vector<128xf32>
    %26 = vector.multi_reduction <add>, %25, %cst_9 [0] : vector<10x128xf32> to vector<128xf32>
    %27 = vector.shape_cast %26 : vector<128xf32> to vector<1x128xf32>
    %cst_10 = arith.constant 1.000000e-01 : f32
    %28 = vector.broadcast %cst_10 : f32 to vector<1x128xf32>
    %29 = arith.subf %27, %28 : vector<1x128xf32>
    %cst_11 = arith.constant 1.500000e+01 : f32
    %30 = vector.broadcast %cst_11 : f32 to vector<1x128xf32>
    %31 = arith.mulf %30, %29 : vector<1x128xf32>
    %32 = arith.subf %23, %31 : vector<1x128xf32>
    %c128_i32 = arith.constant 128 : i32
    %33 = arith.muli %arg0, %c128_i32 : i32
    %34 = tpu.iota {dimensions = array<i32: 1>} : vector<1x128xi32>
    %35 = vector.broadcast %33 : i32 to vector<1x128xi32>
    %36 = arith.addi %35, %34 : vector<1x128xi32>
    %c8_i32 = arith.constant 8 : i32
    %37 = vector.broadcast %c8_i32 : i32 to vector<1x128xi32>
    %38 = arith.cmpi slt, %36, %37 : vector<1x128xi32>
    %cst_12 = arith.constant 0.000000e+00 : f32
    %39 = vector.broadcast %cst_12 : f32 to vector<1x128xf32>
    %40 = arith.select %38, %32, %39 : vector<1x128xi1>, vector<1x128xf32>
    %cst_13 = arith.constant dense<0.000000e+00> : vector<1xf32>
    %41 = vector.multi_reduction <add>, %40, %cst_13 [1] : vector<1x128xf32> to vector<1xf32>
    %42 = vector.shape_cast %41 : vector<1xf32> to vector<1x1xf32>
    %43 = tpu.iota {dimensions = array<i32: 1>} : vector<1x128xi32>
    %c0_i32 = arith.constant 0 : i32
    %44 = vector.broadcast %c0_i32 : i32 to vector<1x128xi32>
    %45 = arith.cmpi eq, %43, %44 : vector<1x128xi32>
    %cst_14 = arith.constant 0.000000e+00 : f32
    %46 = vector.shape_cast %42 : vector<1x1xf32> to vector<1x1xf32>
    %47 = vector.broadcast %46 : vector<1x1xf32> to vector<1x128xf32>
    %48 = vector.broadcast %cst_14 : f32 to vector<1x128xf32>
    %49 = arith.select %45, %47, %48 : vector<1x128xi1>, vector<1x128xf32>
    %c0_15 = arith.constant 0 : index
    %c0_16 = arith.constant 0 : index
    %50 = vector.load %arg4[%c0_15, %c0_16] : memref<1x128xf32, #tpu.memory_space<vmem>>, vector<1x128xf32>
    tpu.vector_store %arg4[%c0_15, %c0_16], %49 {strides = array<i32>} : memref<1x128xf32, #tpu.memory_space<vmem>>, vector<1x128xf32>,
    return
  }
  func.func @transform_0(%arg0: i32, %arg1: memref<1xf32, #tpu.memory_space<smem>>) -> (i32, i32) {
    %c0_i32 = arith.constant 0 : i32
    %c0_i32_0 = arith.constant 0 : i32
    return %c0_i32, %arg0 : i32, i32
  }
  func.func @transform_1(%arg0: i32, %arg1: memref<1xf32, #tpu.memory_space<smem>>) -> (i32, i32) {
    %c0_i32 = arith.constant 0 : i32
    %c0_i32_0 = arith.constant 0 : i32
    return %c0_i32, %arg0 : i32, i32
  }
  func.func @transform_2(%arg0: i32, %arg1: memref<1xf32, #tpu.memory_space<smem>>) -> (i32, i32) {
    %c0_i32 = arith.constant 0 : i32
    %c0_i32_0 = arith.constant 0 : i32
    return %c0_i32, %arg0 : i32, i32
  }
}

</mosaic_0001>

<bundles_post_ra>
// kernel: tpu_custom_call.1
= control target key start
LH: loop header
LB: loop body
LE: loop exit
PB: predicated region body
PF: predicated region fallthrough
CT: control target
= control target key end

     0   :  { %9 = vsyncpa [#allocation5], 0  ;;  %s228_s0 = inlined_call_operand.<no memory space> [shape: f32[1], index: 0, kind: input, shape index: {}]   ;;  %s229_s1 = inlined_call_operand.hbm [shape: f32[10,128], index: 1, kind: input, shape index: {}]   ;;  %s230_s2 = inlined_call_operand.vmem [shape: s32[1,128], index: 2, kind: input, shape index: {}]   ;;  %s231_s3 = inlined_call_operand.hbm [shape: f32[1,128], index: 3, kind: output, shape index: {}]  }
   0x1   :  { %10 = vsyncpa [#allocation6], 0  ;;  %s15_s14 = sshll.u32 %s229_s1, 4  ;;  %s185_s15 = smov [#allocation4]   ;;  %s16_s14 = int_to_ptr.hbm [resolvable:$true] %s15_s14 }
   0x2   :  { %s17_s16 = sshll.u32 %s185_s15, 4  ;;  %s186_s17 = smov 128   ;;  %s18_s16 = int_to_ptr.vmem [resolvable:$true] %s17_s16 }
   0x3   :  { %s187_s18 = smov 8  }
   0x4   :  { %23 = dma.hbm_to_vmem [thread:$0]  %s16_s14, 256, %s18_s16, [#allocation5], %s186_s17, %s186_s17, %s187_s18  }
   0x5   :  { %181 = dma.done.wait [#allocation5], 256  }
   0x6   :  { %182 = vsyncadd [#allocation5], 4294967040  ;;  %v34_v0 = vlaneseq  ;;  %v40_v2 = vstv %s228_s0  ;;  %v30_v4 = vld [vmem:[#allocation4] sm:$0xff]  ;;  %v31_v5 = vld [vmem:[#allocation4 + $0x8] sm:$0x3]  ;;  %vm51_vm2 = vcmask 1041408  }
   0x7   :  { %v126_v6 = vld [vmem:[%s230_s2] ss:$0 sm:$0xff]  ;;  %v41_v7 = vadd.f32 %v40_v2, %v30_v4  ;;  %v42_v8 = vadd.f32 %v40_v2, %v31_v5  ;;  %s188_s0 = smov [#allocation7]   ;;  %s109_s24 = sshll.u32 %s231_s3, 4  ;;  %s110_s24 = int_to_ptr.hbm [resolvable:$true] %s109_s24 }
   0x8   :  { %v35_v1 = vshrl.u32 %v34_v0, 7  ;;  %v92_v51 = vand.u32 127, %v34_v0  ;;  %s107_s2 = sshll.u32 %s188_s0, 4  ;;  %s108_s2 = int_to_ptr.vmem [resolvable:$true] %s107_s2 }
   0x9   :  { %v119_v9 = vadd.f32 -0.1, %v41_v7  ;;  %v120_v10 = vadd.f32 -0.1, %v42_v8  ;;  %v45_v11 = vadd.f32 0.1, %v41_v7 }
   0xa   :  { %v36_v3 = vadd.s32 8, %v35_v1  ;;  %vm38_vm0 = vcmp.eq.s32.totalorder %v35_v1, %v126_v6  ;;  %v46_v12 = vadd.f32 0.1, %v42_v8  ;;  %vm95_vm3 = vcmp.lt.s32.totalorder %v92_v51, 8 }
   0xb   :  { %v47_v13 = vsel %vm38_vm0, %v119_v9, %v45_v11  ;;  %v77_v26 = vsel %vm38_vm0, %v41_v7, 0.0  ;;  %vm99_vm4 = vcmp.eq.s32.totalorder %v92_v51, 0 }
   0xc   :  { %vm39_vm1 = vcmp.eq.s32.totalorder %v36_v3, %v126_v6  ;;  %v49_v15 = vmul.f32 15.0, %v47_v13 }
   0xd   :  { %v48_v14 = vsel %vm39_vm1, %v120_v10, %v46_v12  ;;  %v78_v24 = vsel %vm39_vm1, %v42_v8, 0.0 }
   0xe   :  { %v50_v16 = vmul.f32 15.0, %v48_v14  ;;  %v79_v27 = vsel %vm51_vm2, %v78_v24, 0.0 }
   0xf   :  { %v80_v32 = vadd.f32 %v79_v27, %v77_v26 }
  0x10   :  { %v52_v17 = vsel %vm51_vm2, %v50_v16, -inf }
  0x11   :  { %v53_v18 = vmax.f32 %v49_v15, %v52_v17  ;;  %v81_v33 = vrot.slane %v80_v32, 4 }
  0x13   :  { %v54_v19 = vrot.slane %v53_v18, 4  ;;  %v82_v35 = vadd.f32 %v81_v33, %v80_v32 }
  0x15   :  { %v55_v20 = vmax.f32 %v53_v18, %v54_v19  ;;  %v83_v39 = vrot.slane %v82_v35, 2 }
  0x17   :  { %v56_v21 = vrot.slane %v55_v20, 2  ;;  %v84_v42 = vadd.f32 %v83_v39, %v82_v35 }
  0x19   :  { %v57_v22 = vmax.f32 %v55_v20, %v56_v21  ;;  %v85_v45 = vrot.slane %v84_v42, 1 }
  0x1b   :  { %v58_v23 = vrot.slane %v57_v22, 1  ;;  %v86_v48 = vadd.f32 %v85_v45, %v84_v42 }
  0x1d   :  { %v59_v25 = vmax.f32 %v57_v22, %v58_v23  ;;  %v121_v49 = vadd.f32 -0.1, %v86_v48 }
  0x1f   :  { %v60_v28 = vsub.f32 %v49_v15, %v59_v25  ;;  %v61_v29 = vsub.f32 %v50_v16, %v59_v25  ;;  %v88_v53 = vmul.f32 15.0, %v121_v49 }
  0x21   :  { %v62_v30 = vmul.f32 1.442695, %v60_v28  ;;  %v64_v31 = vmul.f32 1.442695, %v61_v29 }
  0x23   :  { %127 = vpow2.f32 %v62_v30 }
  0x24   :  { %129 = vpow2.f32 %v64_v31 }
  0x29   :  { %v128_v34 = vpop.eup %127 }
  0x2a   :  { %v130_v36 = vpop.eup %129 }
  0x2b   :  { %v66_v37 = vsel %vm51_vm2, %v130_v36, 0.0 }
  0x2c   :  { %v67_v38 = vadd.f32 %v128_v34, %v66_v37 }
  0x2e   :  { %v68_v40 = vrot.slane %v67_v38, 4 }
  0x30   :  { %v69_v41 = vadd.f32 %v68_v40, %v67_v38 }
  0x32   :  { %v70_v43 = vrot.slane %v69_v41, 2 }
  0x34   :  { %v71_v44 = vadd.f32 %v70_v43, %v69_v41 }
  0x36   :  { %v72_v46 = vrot.slane %v71_v44, 1 }
  0x38   :  { %v73_v47 = vadd.f32 %v72_v46, %v71_v44 }
  0x3a   :  { %131 = vlog2.f32 %v73_v47 }
  0x40   :  { %v132_v50 = vpop.eup %131 }
  0x41   :  { %v75_v52 = vmul.f32 0.6931472, %v132_v50 }
  0x43   :  { %v76_v54 = vadd.f32 %v75_v52, %v59_v25 }
  0x45   :  { %v89_v55 = vsub.f32 %v76_v54, %v88_v53 }
  0x47   :  { %v96_v56 = vsel %vm95_vm3, %v89_v55, 0.0 }
  0x48   :  { %97 = vadd.xlane.f32.xlu0 %v96_v56 }
  0xbb   :  { %v98_v57 = vpop.xlane.xlu0 %97 }
  0xbc   :  { %v100_v58 = vsel %vm99_vm4, %v98_v57, 0.0 }
  0xbd   :  { %101 = vst [vmem:[#allocation7] sm:$0x1] %v100_v58 }
  0xbe   :  { %112 = dma.vmem_to_hbm [thread:$0]  %s108_s2, 16, %s110_s24, [#allocation6]  }
  0xbf   :  { %183 = dma.done.wait [#allocation6], 16  }
  0xc0   :  { %184 = vsyncadd [#allocation6], 4294967280 }
  0xc1   :  { %117 = vsyncpa [#allocation5], 1 }
  0xc2   :  { %118 = vsyncpa [#allocation6], 1 }

</bundles_post_ra>
